<compile_context>
chip_gen: v7x
topology: tpu7x:2x2x1
jax: 0.10.0
libtpu: 0.0.40
codegen_flags: <defaults>
</compile_context>

<pallas_src>
import math
import functools

import numpy as np
import jax
import jax.numpy as jnp
from jax.experimental import pallas as pl
from jax.experimental.pallas import tpu as pltpu

# ---------------- synthetic config (small, consistent with the module) ------
HIDDEN = 64
NUM_HEADS = 4
NUM_KV_HEADS = 2
HEAD_DIM = HIDDEN // NUM_HEADS                      # 16
NUM_KV_GROUPS = NUM_HEADS // NUM_KV_HEADS           # 2
GS = 2 + NUM_KV_GROUPS                              # 4 (q groups + k + v)
QKV_OUT = (NUM_HEADS + 2 * NUM_KV_HEADS) * HEAD_DIM  # 128 (lane-dense)
K_OFF = NUM_HEADS * HEAD_DIM                         # 64  (start of K region)
V_OFF = K_OFF + NUM_KV_HEADS * HEAD_DIM              # 96  (start of V region)
ROPE_THETA = 10000.0
BIAS = False          # config.bias default; TODO(synk): add bias path if needed

BATCH = 2
SEQ = 8

NEG_INF = float(jnp.finfo(jnp.float32).min)  # large-negative mask (not -inf)


# ---------------- fused Pallas kernel ----------------------------------------
def _fused_attn_kernel(x_ref, wm_ref, wr_ref, cos_ref, sin_ref, wo_ref,
                       o_ref, attn_ref, *, batch, seq):
    # ---- wqkv projection over ALL batch*seq rows at once (bf16 MXU, f32 acc)
    xb = x_ref[...].astype(jnp.bfloat16)                       # (B*S, 64)
    qkv = jnp.dot(xb, wm_ref[...],
                  preferred_element_type=jnp.float32)          # (B*S, 128)
    qkv_rot = jnp.dot(xb, wr_ref[...],
                      preferred_element_type=jnp.float32)      # rotate_half(qkv)

    # ---- RoPE over the whole Q|K lane region in one full-width FMA ----------
    # (cos=1 / sin=0 in the V columns; softmax scale already folded into Q).
    rope = qkv * cos_ref[...] + qkv_rot * sin_ref[...]         # (B*S, 128) f32

    # ---- causal mask from iota (no HBM mask tensor) --------------------------
    r = jax.lax.broadcasted_iota(jnp.int32, (seq, seq), 0)
    c = jax.lax.broadcasted_iota(jnp.int32, (seq, seq), 1)
    causal = c <= r

    # ---- GQA attention per (batch, kv head, group); KV touched once per batch
    for b in range(batch):
        rb = rope[b * seq:(b + 1) * seq, :].astype(jnp.bfloat16)   # (S, 128)
        for kvh in range(NUM_KV_HEADS):
            k_h = rb[:, K_OFF + kvh * HEAD_DIM:K_OFF + (kvh + 1) * HEAD_DIM]
            v_h = rb[:, V_OFF + kvh * HEAD_DIM:V_OFF + (kvh + 1) * HEAD_DIM]
            for g in range(NUM_KV_GROUPS):
                h = kvh * NUM_KV_GROUPS + g         # global head index
                q_h = rb[:, h * HEAD_DIM:(h + 1) * HEAD_DIM]

                # scores = (q * scale) @ k^T   (scale pre-folded into weights)
                s = jax.lax.dot_general(
                    q_h, k_h, (((1,), (1,)), ((), ())),
                    preferred_element_type=jnp.float32)          # (S, S) f32
                s = jnp.where(causal, s, NEG_INF)

                # fp32 softmax (matches softmax(..., dtype=float32));
                # approx reciprocal on the EUP (~1e-3 rel. error vs exact).
                s = s - jnp.max(s, axis=-1, keepdims=True)
                p = jnp.exp(s)
                p = p * pl.reciprocal(jnp.sum(p, axis=-1, keepdims=True),
                                      approx=True)

                o_h = jnp.dot(p.astype(jnp.bfloat16), v_h,
                              preferred_element_type=jnp.float32)  # (S, D)
                # static-offset scratch write instead of lane concat
                attn_ref[b * seq:(b + 1) * seq,
                         h * HEAD_DIM:(h + 1) * HEAD_DIM] = o_h

    # ---- single K=64 wo projection; output block is lane-dense (B*S, 128) ---
    attn_bf = attn_ref[...].astype(jnp.bfloat16)                 # (B*S, 64)
    o_ref[...] = jnp.dot(attn_bf, wo_ref[...],
                         preferred_element_type=jnp.float32).astype(o_ref.dtype)


# ---------------- host-side parameter preparation -----------------------------
def _prepare_params(wqkv_np, wo_np):
    """Permute/fold the reference-layout weights into the kernel layout.

    wqkv_np: (HIDDEN, QKV_OUT) in reference column order 'h gs d'
             (kv-head major; g in [0,groups) query groups, then key, then value)
    wo_np:   (NUM_HEADS*HEAD_DIM, HIDDEN), rows in global head order.
    """
    D, G, KV = HEAD_DIM, NUM_KV_GROUPS, NUM_KV_HEADS
    half = D // 2

    # column permutation: new layout [Q0|Q1|Q2|Q3|K0|K1|V0|V1]
    perm = np.empty(QKV_OUT, np.int64)
    for kvh in range(KV):
        src = kvh * GS * D
        for g in range(G):
            h = kvh * G + g
            perm[h * D:(h + 1) * D] = np.arange(src + g * D, src + (g + 1) * D)
        perm[K_OFF + kvh * D:K_OFF + (kvh + 1) * D] = \
            np.arange(src + G * D, src + (G + 1) * D)
        perm[V_OFF + kvh * D:V_OFF + (kvh + 1) * D] = \
            np.arange(src + (G + 1) * D, src + (G + 2) * D)
    w_main = np.array(wqkv_np[:, perm], dtype=np.float32)

    # fold softmax scale 1/sqrt(D) into the Q columns
    w_main[:, :NUM_HEADS * D] *= 1.0 / math.sqrt(D)

    # rotate_half folded into a companion weight matrix (V columns stay zero)
    w_rot = np.zeros_like(w_main)
    qk_bases = [h * D for h in range(NUM_HEADS)] + \
               [K_OFF + kvh * D for kvh in range(KV)]
    for base in qk_bases:
        w_rot[:, base:base + half] = -w_main[:, base + half:base + D]
        w_rot[:, base + half:base + D] = w_main[:, base:base + half]

    # zero-pad wo columns to 128 so the kernel's output store is lane-dense
    wo_pad = np.zeros((NUM_HEADS * D, QKV_OUT), np.float32)
    wo_pad[:, :HIDDEN] = wo_np

    return {"w_main": jnp.asarray(w_main, jnp.bfloat16),
            "w_rot": jnp.asarray(w_rot, jnp.bfloat16),
            "wo_pad": jnp.asarray(wo_pad, jnp.bfloat16)}


def init_params(key):
    k1, k2 = jax.random.split(key, 2)
    # reference-layout weights, stored pre-transposed to (in, out)
    wqkv = 0.02 * jax.random.normal(k1, (HIDDEN, QKV_OUT), jnp.float32)
    wo = 0.02 * jax.random.normal(k2, (NUM_HEADS * HEAD_DIM, HIDDEN),
                                  jnp.float32)
    return _prepare_params(np.asarray(wqkv), np.asarray(wo))


# ---------------- lane-dense RoPE tables (tiny host-side precompute) ----------
def _rope_tables(bsz, q_len, base=ROPE_THETA):
    inv_freq = 1.0 / (base ** (np.arange(0, HEAD_DIM, 2, dtype=np.float64)
                               / HEAD_DIM))
    t = np.arange(q_len, dtype=np.float64)
    freqs = np.outer(t, inv_freq)
    emb = np.concatenate([freqs, freqs], axis=-1)            # (S, D)
    cos = np.cos(emb).astype(np.float32)
    sin = np.sin(emb).astype(np.float32)

    cos_full = np.ones((q_len, QKV_OUT), np.float32)         # V region: cos=1
    sin_full = np.zeros((q_len, QKV_OUT), np.float32)        # V region: sin=0
    for hh in range(NUM_HEADS + NUM_KV_HEADS):                # Q and K regions
        cos_full[:, hh * HEAD_DIM:(hh + 1) * HEAD_DIM] = cos
        sin_full[:, hh * HEAD_DIM:(hh + 1) * HEAD_DIM] = sin
    cos_full = np.tile(cos_full, (bsz, 1))                    # (B*S, 128)
    sin_full = np.tile(sin_full, (bsz, 1))
    return jnp.asarray(cos_full), jnp.asarray(sin_full)


# ---------------- forward ------------------------------------------------------
def internlm2_attention_forward(params, hidden_states, attention_mask=None,
                                position_ids=None):
    # Only the standard causal mask (is_causal=True, no padding) is supported;
    # it is generated inside the kernel.  Like the reference prefill branch,
    # positions are effectively arange(kv_seq_len); no KV-cache path.
    del attention_mask, position_ids
    bsz, q_len, hidden = hidden_states.shape
    assert hidden == HIDDEN

    rows = bsz * q_len
    cos_full, sin_full = _rope_tables(bsz, q_len)
    x2d = hidden_states.reshape(rows, hidden)

    kernel = functools.partial(_fused_attn_kernel, batch=bsz, seq=q_len)

    out2d = pl.pallas_call(
        kernel,
        out_shape=jax.ShapeDtypeStruct((rows, QKV_OUT), hidden_states.dtype),
        grid=(1,),                                   # single fused step
        in_specs=[
            pl.BlockSpec((rows, HIDDEN), lambda i: (0, 0)),          # x
            pl.BlockSpec((HIDDEN, QKV_OUT), lambda i: (0, 0)),       # w_main
            pl.BlockSpec((HIDDEN, QKV_OUT), lambda i: (0, 0)),       # w_rot
            pl.BlockSpec((rows, QKV_OUT), lambda i: (0, 0)),         # cos
            pl.BlockSpec((rows, QKV_OUT), lambda i: (0, 0)),         # sin
            pl.BlockSpec((NUM_HEADS * HEAD_DIM, QKV_OUT),
                         lambda i: (0, 0)),                          # wo (padded)
        ],
        out_specs=pl.BlockSpec((rows, QKV_OUT), lambda i: (0, 0)),
        scratch_shapes=[pltpu.VMEM((rows, NUM_HEADS * HEAD_DIM), jnp.float32)],
        compiler_params=pltpu.CompilerParams(
            dimension_semantics=("arbitrary",)),
    )(x2d, params["w_main"], params["w_rot"], cos_full, sin_full,
      params["wo_pad"])

    # wrapper-side layout plumbing: drop the zero-padded lanes, restore (B,S,H)
    return out2d[:, :hidden].reshape(bsz, q_len, hidden)


if __name__ == "__main__":
    key = jax.random.PRNGKey(0)
    kp, kx = jax.random.split(key)
    params = init_params(kp)

    hidden_states = jax.random.normal(kx, (BATCH, SEQ, HIDDEN), jnp.float32)
    position_ids = jnp.broadcast_to(jnp.arange(SEQ)[None, :], (BATCH, SEQ))

    out = internlm2_attention_forward(params, hidden_states,
                                      attention_mask=None,
                                      position_ids=position_ids)
    out = jax.block_until_ready(out)
    assert out.shape == (BATCH, SEQ, HIDDEN)
    assert bool(jnp.all(jnp.isfinite(out)))
    print("KERNEL_OK")
</pallas_src>

<mosaic_0001>
module attributes {stable_mosaic.version = 11 : i64} {
  func.func @_fused_attn_kernel(%arg0: i32, %arg1: memref<16x64xf32, #tpu.memory_space<vmem>>, %arg2: memref<64x128xbf16, #tpu.memory_space<vmem>>, %arg3: memref<64x128xbf16, #tpu.memory_space<vmem>>, %arg4: memref<16x128xf32, #tpu.memory_space<vmem>>, %arg5: memref<16x128xf32, #tpu.memory_space<vmem>>, %arg6: memref<64x128xbf16, #tpu.memory_space<vmem>>, %arg7: memref<16x128xf32, #tpu.memory_space<vmem>>, %arg8: memref<16x64xf32, #tpu.memory_space<vmem>>) attributes {dimension_semantics = [#tpu.dimension_semantics<arbitrary>], iteration_bounds = array<i64: 1>, scalar_prefetch = 0 : i64, scratch_operands = 1 : i64, tpu.core_type = #tpu.core_type<tc>, window_params = [{pipeline_mode = #tpu.pipeline_mode<synchronous>, transform_indices = @transform_0, window_bounds = array<i64: 16, 64>}, {pipeline_mode = #tpu.pipeline_mode<synchronous>, transform_indices = @transform_1, window_bounds = array<i64: 64, 128>}, {pipeline_mode = #tpu.pipeline_mode<synchronous>, transform_indices = @transform_2, window_bounds = array<i64: 64, 128>}, {pipeline_mode = #tpu.pipeline_mode<synchronous>, transform_indices = @transform_3, window_bounds = array<i64: 16, 128>}, {pipeline_mode = #tpu.pipeline_mode<synchronous>, transform_indices = @transform_4, window_bounds = array<i64: 16, 128>}, {pipeline_mode = #tpu.pipeline_mode<synchronous>, transform_indices = @transform_5, window_bounds = array<i64: 64, 128>}, {pipeline_mode = #tpu.pipeline_mode<synchronous>, transform_indices = @transform_6, window_bounds = array<i64: 16, 128>}]} {
    %c0 = arith.constant 0 : index
    %c0_0 = arith.constant 0 : index
    %0 = vector.load %arg1[%c0, %c0_0] : memref<16x64xf32, #tpu.memory_space<vmem>>, vector<16x64xf32>
    %1 = arith.truncf %0 : vector<16x64xf32> to vector<16x64xbf16>
    %c0_1 = arith.constant 0 : index
    %c0_2 = arith.constant 0 : index
    %2 = vector.load %arg2[%c0_1, %c0_2] : memref<64x128xbf16, #tpu.memory_space<vmem>>, vector<64x128xbf16>
    %cst = arith.constant dense<0.000000e+00> : vector<16x128xf32>
    %3 = tpu.matmul %1, %2, %cst {dimension_numbers = #tpu.dot_dimension_numbers<[1], [0], [0], [1], [0, 0, 1, 1], [], []>} : vector<16x64xbf16>, vector<64x128xbf16>, vector<16x128xf32> -> vector<16x128xf32>
    %c0_3 = arith.constant 0 : index
    %c0_4 = arith.constant 0 : index
    %4 = vector.load %arg3[%c0_3, %c0_4] : memref<64x128xbf16, #tpu.memory_space<vmem>>, vector<64x128xbf16>
    %cst_5 = arith.constant dense<0.000000e+00> : vector<16x128xf32>
    %5 = tpu.matmul %1, %4, %cst_5 {dimension_numbers = #tpu.dot_dimension_numbers<[1], [0], [0], [1], [0, 0, 1, 1], [], []>} : vector<16x64xbf16>, vector<64x128xbf16>, vector<16x128xf32> -> vector<16x128xf32>
    %c0_6 = arith.constant 0 : index
    %c0_7 = arith.constant 0 : index
    %6 = vector.load %arg4[%c0_6, %c0_7] : memref<16x128xf32, #tpu.memory_space<vmem>>, vector<16x128xf32>
    %7 = arith.mulf %3, %6 : vector<16x128xf32>
    %c0_8 = arith.constant 0 : index
    %c0_9 = arith.constant 0 : index
    %8 = vector.load %arg5[%c0_8, %c0_9] : memref<16x128xf32, #tpu.memory_space<vmem>>, vector<16x128xf32>
    %9 = arith.mulf %5, %8 : vector<16x128xf32>
    %10 = arith.addf %7, %9 : vector<16x128xf32>
    %11 = tpu.iota {dimensions = array<i32: 0>} : vector<8x8xi32>
    %12 = tpu.iota {dimensions = array<i32: 1>} : vector<8x8xi32>
    %13 = arith.cmpi sle, %12, %11 : vector<8x8xi32>
    %14 = vector.extract_strided_slice %10 {offsets = [0, 0], sizes = [8, 128], strides = [1, 1]} : vector<16x128xf32> to vector<8x128xf32>
    %15 = arith.truncf %14 : vector<8x128xf32> to vector<8x128xbf16>
    %16 = vector.extract_strided_slice %15 {offsets = [0, 64], sizes = [8, 16], strides = [1, 1]} : vector<8x128xbf16> to vector<8x16xbf16>
    %17 = vector.extract_strided_slice %15 {offsets = [0, 96], sizes = [8, 16], strides = [1, 1]} : vector<8x128xbf16> to vector<8x16xbf16>
    %18 = vector.extract_strided_slice %15 {offsets = [0, 0], sizes = [8, 16], strides = [1, 1]} : vector<8x128xbf16> to vector<8x16xbf16>
    %cst_10 = arith.constant dense<0.000000e+00> : vector<8x8xf32>
    %19 = tpu.matmul %18, %16, %cst_10 {dimension_numbers = #tpu.dot_dimension_numbers<[1], [1], [0], [0], [0, 0, 1, 0], [], []>} : vector<8x16xbf16>, vector<8x16xbf16>, vector<8x8xf32> -> vector<8x8xf32>
    %cst_11 = arith.constant -3.40282347E+38 : f32
    %20 = vector.broadcast %cst_11 : f32 to vector<8x8xf32>
    %21 = arith.select %13, %19, %20 : vector<8x8xi1>, vector<8x8xf32>
    %cst_12 = arith.constant dense<0xFF800000> : vector<8xf32>
    %22 = vector.multi_reduction <maximumf>, %21, %cst_12 [1] : vector<8x8xf32> to vector<8xf32>
    %23 = vector.shape_cast %22 : vector<8xf32> to vector<8x1xf32>
    %24 = vector.broadcast %23 : vector<8x1xf32> to vector<8x8xf32>
    %25 = arith.subf %21, %24 : vector<8x8xf32>
    %26 = math.exp %25 : vector<8x8xf32>
    %cst_13 = arith.constant dense<0.000000e+00> : vector<8xf32>
    %27 = vector.multi_reduction <add>, %26, %cst_13 [1] : vector<8x8xf32> to vector<8xf32>
    %28 = vector.shape_cast %27 : vector<8xf32> to vector<8x1xf32>
    %29 = tpu.reciprocal %28 {approx = true} : vector<8x1xf32> -> vector<8x1xf32>
    %30 = vector.broadcast %29 : vector<8x1xf32> to vector<8x8xf32>
    %31 = arith.mulf %26, %30 : vector<8x8xf32>
    %32 = arith.truncf %31 : vector<8x8xf32> to vector<8x8xbf16>
    %cst_14 = arith.constant dense<0.000000e+00> : vector<8x16xf32>
    %33 = tpu.matmul %32, %17, %cst_14 {dimension_numbers = #tpu.dot_dimension_numbers<[1], [0], [0], [1], [0, 0, 1, 1], [], []>} : vector<8x8xbf16>, vector<8x16xbf16>, vector<8x16xf32> -> vector<8x16xf32>
    %c0_15 = arith.constant 0 : index
    %c0_16 = arith.constant 0 : index
    %34 = vector.load %arg8[%c0_15, %c0_16] : memref<16x64xf32, #tpu.memory_space<vmem>>, vector<8x16xf32>
    tpu.vector_store %arg8[%c0_15, %c0_16], %33 {strides = array<i32>} : memref<16x64xf32, #tpu.memory_space<vmem>>, vector<8x16xf32>,
    %35 = vector.extract_strided_slice %15 {offsets = [0, 16], sizes = [8, 16], strides = [1, 1]} : vector<8x128xbf16> to vector<8x16xbf16>
    %cst_17 = arith.constant dense<0.000000e+00> : vector<8x8xf32>
    %36 = tpu.matmul %35, %16, %cst_17 {dimension_numbers = #tpu.dot_dimension_numbers<[1], [1], [0], [0], [0, 0, 1, 0], [], []>} : vector<8x16xbf16>, vector<8x16xbf16>, vector<8x8xf32> -> vector<8x8xf32>
    %cst_18 = arith.constant -3.40282347E+38 : f32
    %37 = vector.broadcast %cst_18 : f32 to vector<8x8xf32>
    %38 = arith.select %13, %36, %37 : vector<8x8xi1>, vector<8x8xf32>
    %cst_19 = arith.constant dense<0xFF800000> : vector<8xf32>
    %39 = vector.multi_reduction <maximumf>, %38, %cst_19 [1] : vector<8x8xf32> to vector<8xf32>
    %40 = vector.shape_cast %39 : vector<8xf32> to vector<8x1xf32>
    %41 = vector.broadcast %40 : vector<8x1xf32> to vector<8x8xf32>
    %42 = arith.subf %38, %41 : vector<8x8xf32>
    %43 = math.exp %42 : vector<8x8xf32>
    %cst_20 = arith.constant dense<0.000000e+00> : vector<8xf32>
    %44 = vector.multi_reduction <add>, %43, %cst_20 [1] : vector<8x8xf32> to vector<8xf32>
    %45 = vector.shape_cast %44 : vector<8xf32> to vector<8x1xf32>
    %46 = tpu.reciprocal %45 {approx = true} : vector<8x1xf32> -> vector<8x1xf32>
    %47 = vector.broadcast %46 : vector<8x1xf32> to vector<8x8xf32>
    %48 = arith.mulf %43, %47 : vector<8x8xf32>
    %49 = arith.truncf %48 : vector<8x8xf32> to vector<8x8xbf16>
    %cst_21 = arith.constant dense<0.000000e+00> : vector<8x16xf32>
    %50 = tpu.matmul %49, %17, %cst_21 {dimension_numbers = #tpu.dot_dimension_numbers<[1], [0], [0], [1], [0, 0, 1, 1], [], []>} : vector<8x8xbf16>, vector<8x16xbf16>, vector<8x16xf32> -> vector<8x16xf32>
    %c0_22 = arith.constant 0 : index
    %c16 = arith.constant 16 : index
    %51 = vector.load %arg8[%c0_22, %c16] : memref<16x64xf32, #tpu.memory_space<vmem>>, vector<8x16xf32>
    tpu.vector_store %arg8[%c0_22, %c16], %50 {strides = array<i32>} : memref<16x64xf32, #tpu.memory_space<vmem>>, vector<8x16xf32>,
    %52 = vector.extract_strided_slice %15 {offsets = [0, 80], sizes = [8, 16], strides = [1, 1]} : vector<8x128xbf16> to vector<8x16xbf16>
    %53 = vector.extract_strided_slice %15 {offsets = [0, 112], sizes = [8, 16], strides = [1, 1]} : vector<8x128xbf16> to vector<8x16xbf16>
    %54 = vector.extract_strided_slice %15 {offsets = [0, 32], sizes = [8, 16], strides = [1, 1]} : vector<8x128xbf16> to vector<8x16xbf16>
    %cst_23 = arith.constant dense<0.000000e+00> : vector<8x8xf32>
    %55 = tpu.matmul %54, %52, %cst_23 {dimension_numbers = #tpu.dot_dimension_numbers<[1], [1], [0], [0], [0, 0, 1, 0], [], []>} : vector<8x16xbf16>, vector<8x16xbf16>, vector<8x8xf32> -> vector<8x8xf32>
    %cst_24 = arith.constant -3.40282347E+38 : f32
    %56 = vector.broadcast %cst_24 : f32 to vector<8x8xf32>
    %57 = arith.select %13, %55, %56 : vector<8x8xi1>, vector<8x8xf32>
    %cst_25 = arith.constant dense<0xFF800000> : vector<8xf32>
    %58 = vector.multi_reduction <maximumf>, %57, %cst_25 [1] : vector<8x8xf32> to vector<8xf32>
    %59 = vector.shape_cast %58 : vector<8xf32> to vector<8x1xf32>
    %60 = vector.broadcast %59 : vector<8x1xf32> to vector<8x8xf32>
    %61 = arith.subf %57, %60 : vector<8x8xf32>
    %62 = math.exp %61 : vector<8x8xf32>
    %cst_26 = arith.constant dense<0.000000e+00> : vector<8xf32>
    %63 = vector.multi_reduction <add>, %62, %cst_26 [1] : vector<8x8xf32> to vector<8xf32>
    %64 = vector.shape_cast %63 : vector<8xf32> to vector<8x1xf32>
    %65 = tpu.reciprocal %64 {approx = true} : vector<8x1xf32> -> vector<8x1xf32>
    %66 = vector.broadcast %65 : vector<8x1xf32> to vector<8x8xf32>
    %67 = arith.mulf %62, %66 : vector<8x8xf32>
    %68 = arith.truncf %67 : vector<8x8xf32> to vector<8x8xbf16>
    %cst_27 = arith.constant dense<0.000000e+00> : vector<8x16xf32>
    %69 = tpu.matmul %68, %53, %cst_27 {dimension_numbers = #tpu.dot_dimension_numbers<[1], [0], [0], [1], [0, 0, 1, 1], [], []>} : vector<8x8xbf16>, vector<8x16xbf16>, vector<8x16xf32> -> vector<8x16xf32>
    %c0_28 = arith.constant 0 : index
    %c32 = arith.constant 32 : index
    %70 = vector.load %arg8[%c0_28, %c32] : memref<16x64xf32, #tpu.memory_space<vmem>>, vector<8x16xf32>
    tpu.vector_store %arg8[%c0_28, %c32], %69 {strides = array<i32>} : memref<16x64xf32, #tpu.memory_space<vmem>>, vector<8x16xf32>,
    %71 = vector.extract_strided_slice %15 {offsets = [0, 48], sizes = [8, 16], strides = [1, 1]} : vector<8x128xbf16> to vector<8x16xbf16>
    %cst_29 = arith.constant dense<0.000000e+00> : vector<8x8xf32>
    %72 = tpu.matmul %71, %52, %cst_29 {dimension_numbers = #tpu.dot_dimension_numbers<[1], [1], [0], [0], [0, 0, 1, 0], [], []>} : vector<8x16xbf16>, vector<8x16xbf16>, vector<8x8xf32> -> vector<8x8xf32>
    %cst_30 = arith.constant -3.40282347E+38 : f32
    %73 = vector.broadcast %cst_30 : f32 to vector<8x8xf32>
    %74 = arith.select %13, %72, %73 : vector<8x8xi1>, vector<8x8xf32>
    %cst_31 = arith.constant dense<0xFF800000> : vector<8xf32>
    %75 = vector.multi_reduction <maximumf>, %74, %cst_31 [1] : vector<8x8xf32> to vector<8xf32>
    %76 = vector.shape_cast %75 : vector<8xf32> to vector<8x1xf32>
    %77 = vector.broadcast %76 : vector<8x1xf32> to vector<8x8xf32>
    %78 = arith.subf %74, %77 : vector<8x8xf32>
    %79 = math.exp %78 : vector<8x8xf32>
    %cst_32 = arith.constant dense<0.000000e+00> : vector<8xf32>
    %80 = vector.multi_reduction <add>, %79, %cst_32 [1] : vector<8x8xf32> to vector<8xf32>
    %81 = vector.shape_cast %80 : vector<8xf32> to vector<8x1xf32>
    %82 = tpu.reciprocal %81 {approx = true} : vector<8x1xf32> -> vector<8x1xf32>
    %83 = vector.broadcast %82 : vector<8x1xf32> to vector<8x8xf32>
    %84 = arith.mulf %79, %83 : vector<8x8xf32>
    %85 = arith.truncf %84 : vector<8x8xf32> to vector<8x8xbf16>
    %cst_33 = arith.constant dense<0.000000e+00> : vector<8x16xf32>
    %86 = tpu.matmul %85, %53, %cst_33 {dimension_numbers = #tpu.dot_dimension_numbers<[1], [0], [0], [1], [0, 0, 1, 1], [], []>} : vector<8x8xbf16>, vector<8x16xbf16>, vector<8x16xf32> -> vector<8x16xf32>
    %c0_34 = arith.constant 0 : index
    %c48 = arith.constant 48 : index
    %87 = vector.load %arg8[%c0_34, %c48] : memref<16x64xf32, #tpu.memory_space<vmem>>, vector<8x16xf32>
    tpu.vector_store %arg8[%c0_34, %c48], %86 {strides = array<i32>} : memref<16x64xf32, #tpu.memory_space<vmem>>, vector<8x16xf32>,
    %88 = vector.extract_strided_slice %10 {offsets = [8, 0], sizes = [8, 128], strides = [1, 1]} : vector<16x128xf32> to vector<8x128xf32>
    %89 = arith.truncf %88 : vector<8x128xf32> to vector<8x128xbf16>
    %90 = vector.extract_strided_slice %89 {offsets = [0, 64], sizes = [8, 16], strides = [1, 1]} : vector<8x128xbf16> to vector<8x16xbf16>
    %91 = vector.extract_strided_slice %89 {offsets = [0, 96], sizes = [8, 16], strides = [1, 1]} : vector<8x128xbf16> to vector<8x16xbf16>
    %92 = vector.extract_strided_slice %89 {offsets = [0, 0], sizes = [8, 16], strides = [1, 1]} : vector<8x128xbf16> to vector<8x16xbf16>
    %cst_35 = arith.constant dense<0.000000e+00> : vector<8x8xf32>
    %93 = tpu.matmul %92, %90, %cst_35 {dimension_numbers = #tpu.dot_dimension_numbers<[1], [1], [0], [0], [0, 0, 1, 0], [], []>} : vector<8x16xbf16>, vector<8x16xbf16>, vector<8x8xf32> -> vector<8x8xf32>
    %cst_36 = arith.constant -3.40282347E+38 : f32
    %94 = vector.broadcast %cst_36 : f32 to vector<8x8xf32>
    %95 = arith.select %13, %93, %94 : vector<8x8xi1>, vector<8x8xf32>
    %cst_37 = arith.constant dense<0xFF800000> : vector<8xf32>
    %96 = vector.multi_reduction <maximumf>, %95, %cst_37 [1] : vector<8x8xf32> to vector<8xf32>
    %97 = vector.shape_cast %96 : vector<8xf32> to vector<8x1xf32>
    %98 = vector.broadcast %97 : vector<8x1xf32> to vector<8x8xf32>
    %99 = arith.subf %95, %98 : vector<8x8xf32>
    %100 = math.exp %99 : vector<8x8xf32>
    %cst_38 = arith.constant dense<0.000000e+00> : vector<8xf32>
    %101 = vector.multi_reduction <add>, %100, %cst_38 [1] : vector<8x8xf32> to vector<8xf32>
    %102 = vector.shape_cast %101 : vector<8xf32> to vector<8x1xf32>
    %103 = tpu.reciprocal %102 {approx = true} : vector<8x1xf32> -> vector<8x1xf32>
    %104 = vector.broadcast %103 : vector<8x1xf32> to vector<8x8xf32>
    %105 = arith.mulf %100, %104 : vector<8x8xf32>
    %106 = arith.truncf %105 : vector<8x8xf32> to vector<8x8xbf16>
    %cst_39 = arith.constant dense<0.000000e+00> : vector<8x16xf32>
    %107 = tpu.matmul %106, %91, %cst_39 {dimension_numbers = #tpu.dot_dimension_numbers<[1], [0], [0], [1], [0, 0, 1, 1], [], []>} : vector<8x8xbf16>, vector<8x16xbf16>, vector<8x16xf32> -> vector<8x16xf32>
    %c8 = arith.constant 8 : index
    %c0_40 = arith.constant 0 : index
    %108 = vector.load %arg8[%c8, %c0_40] : memref<16x64xf32, #tpu.memory_space<vmem>>, vector<8x16xf32>
    tpu.vector_store %arg8[%c8, %c0_40], %107 {strides = array<i32>} : memref<16x64xf32, #tpu.memory_space<vmem>>, vector<8x16xf32>,
    %109 = vector.extract_strided_slice %89 {offsets = [0, 16], sizes = [8, 16], strides = [1, 1]} : vector<8x128xbf16> to vector<8x16xbf16>
    %cst_41 = arith.constant dense<0.000000e+00> : vector<8x8xf32>
    %110 = tpu.matmul %109, %90, %cst_41 {dimension_numbers = #tpu.dot_dimension_numbers<[1], [1], [0], [0], [0, 0, 1, 0], [], []>} : vector<8x16xbf16>, vector<8x16xbf16>, vector<8x8xf32> -> vector<8x8xf32>
    %cst_42 = arith.constant -3.40282347E+38 : f32
    %111 = vector.broadcast %cst_42 : f32 to vector<8x8xf32>
    %112 = arith.select %13, %110, %111 : vector<8x8xi1>, vector<8x8xf32>
    %cst_43 = arith.constant dense<0xFF800000> : vector<8xf32>
    %113 = vector.multi_reduction <maximumf>, %112, %cst_43 [1] : vector<8x8xf32> to vector<8xf32>
    %114 = vector.shape_cast %113 : vector<8xf32> to vector<8x1xf32>
    %115 = vector.broadcast %114 : vector<8x1xf32> to vector<8x8xf32>
    %116 = arith.subf %112, %115 : vector<8x8xf32>
    %117 = math.exp %116 : vector<8x8xf32>
    %cst_44 = arith.constant dense<0.000000e+00> : vector<8xf32>
    %118 = vector.multi_reduction <add>, %117, %cst_44 [1] : vector<8x8xf32> to vector<8xf32>
    %119 = vector.shape_cast %118 : vector<8xf32> to vector<8x1xf32>
    %120 = tpu.reciprocal %119 {approx = true} : vector<8x1xf32> -> vector<8x1xf32>
    %121 = vector.broadcast %120 : vector<8x1xf32> to vector<8x8xf32>
    %122 = arith.mulf %117, %121 : vector<8x8xf32>
    %123 = arith.truncf %122 : vector<8x8xf32> to vector<8x8xbf16>
    %cst_45 = arith.constant dense<0.000000e+00> : vector<8x16xf32>
    %124 = tpu.matmul %123, %91, %cst_45 {dimension_numbers = #tpu.dot_dimension_numbers<[1], [0], [0], [1], [0, 0, 1, 1], [], []>} : vector<8x8xbf16>, vector<8x16xbf16>, vector<8x16xf32> -> vector<8x16xf32>
    %c8_46 = arith.constant 8 : index
    %c16_47 = arith.constant 16 : index
    %125 = vector.load %arg8[%c8_46, %c16_47] : memref<16x64xf32, #tpu.memory_space<vmem>>, vector<8x16xf32>
    tpu.vector_store %arg8[%c8_46, %c16_47], %124 {strides = array<i32>} : memref<16x64xf32, #tpu.memory_space<vmem>>, vector<8x16xf32>,
    %126 = vector.extract_strided_slice %89 {offsets = [0, 80], sizes = [8, 16], strides = [1, 1]} : vector<8x128xbf16> to vector<8x16xbf16>
    %127 = vector.extract_strided_slice %89 {offsets = [0, 112], sizes = [8, 16], strides = [1, 1]} : vector<8x128xbf16> to vector<8x16xbf16>
    %128 = vector.extract_strided_slice %89 {offsets = [0, 32], sizes = [8, 16], strides = [1, 1]} : vector<8x128xbf16> to vector<8x16xbf16>
    %cst_48 = arith.constant dense<0.000000e+00> : vector<8x8xf32>
    %129 = tpu.matmul %128, %126, %cst_48 {dimension_numbers = #tpu.dot_dimension_numbers<[1], [1], [0], [0], [0, 0, 1, 0], [], []>} : vector<8x16xbf16>, vector<8x16xbf16>, vector<8x8xf32> -> vector<8x8xf32>
    %cst_49 = arith.constant -3.40282347E+38 : f32
    %130 = vector.broadcast %cst_49 : f32 to vector<8x8xf32>
    %131 = arith.select %13, %129, %130 : vector<8x8xi1>, vector<8x8xf32>
    %cst_50 = arith.constant dense<0xFF800000> : vector<8xf32>
    %132 = vector.multi_reduction <maximumf>, %131, %cst_50 [1] : vector<8x8xf32> to vector<8xf32>
    %133 = vector.shape_cast %132 : vector<8xf32> to vector<8x1xf32>
    %134 = vector.broadcast %133 : vector<8x1xf32> to vector<8x8xf32>
    %135 = arith.subf %131, %134 : vector<8x8xf32>
    %136 = math.exp %135 : vector<8x8xf32>
    %cst_51 = arith.constant dense<0.000000e+00> : vector<8xf32>
    %137 = vector.multi_reduction <add>, %136, %cst_51 [1] : vector<8x8xf32> to vector<8xf32>
    %138 = vector.shape_cast %137 : vector<8xf32> to vector<8x1xf32>
    %139 = tpu.reciprocal %138 {approx = true} : vector<8x1xf32> -> vector<8x1xf32>
    %140 = vector.broadcast %139 : vector<8x1xf32> to vector<8x8xf32>
    %141 = arith.mulf %136, %140 : vector<8x8xf32>
    %142 = arith.truncf %141 : vector<8x8xf32> to vector<8x8xbf16>
    %cst_52 = arith.constant dense<0.000000e+00> : vector<8x16xf32>
    %143 = tpu.matmul %142, %127, %cst_52 {dimension_numbers = #tpu.dot_dimension_numbers<[1], [0], [0], [1], [0, 0, 1, 1], [], []>} : vector<8x8xbf16>, vector<8x16xbf16>, vector<8x16xf32> -> vector<8x16xf32>
    %c8_53 = arith.constant 8 : index
    %c32_54 = arith.constant 32 : index
    %144 = vector.load %arg8[%c8_53, %c32_54] : memref<16x64xf32, #tpu.memory_space<vmem>>, vector<8x16xf32>
    tpu.vector_store %arg8[%c8_53, %c32_54], %143 {strides = array<i32>} : memref<16x64xf32, #tpu.memory_space<vmem>>, vector<8x16xf32>,
    %145 = vector.extract_strided_slice %89 {offsets = [0, 48], sizes = [8, 16], strides = [1, 1]} : vector<8x128xbf16> to vector<8x16xbf16>
    %cst_55 = arith.constant dense<0.000000e+00> : vector<8x8xf32>
    %146 = tpu.matmul %145, %126, %cst_55 {dimension_numbers = #tpu.dot_dimension_numbers<[1], [1], [0], [0], [0, 0, 1, 0], [], []>} : vector<8x16xbf16>, vector<8x16xbf16>, vector<8x8xf32> -> vector<8x8xf32>
    %cst_56 = arith.constant -3.40282347E+38 : f32
    %147 = vector.broadcast %cst_56 : f32 to vector<8x8xf32>
    %148 = arith.select %13, %146, %147 : vector<8x8xi1>, vector<8x8xf32>
    %cst_57 = arith.constant dense<0xFF800000> : vector<8xf32>
    %149 = vector.multi_reduction <maximumf>, %148, %cst_57 [1] : vector<8x8xf32> to vector<8xf32>
    %150 = vector.shape_cast %149 : vector<8xf32> to vector<8x1xf32>
    %151 = vector.broadcast %150 : vector<8x1xf32> to vector<8x8xf32>
    %152 = arith.subf %148, %151 : vector<8x8xf32>
    %153 = math.exp %152 : vector<8x8xf32>
    %cst_58 = arith.constant dense<0.000000e+00> : vector<8xf32>
    %154 = vector.multi_reduction <add>, %153, %cst_58 [1] : vector<8x8xf32> to vector<8xf32>
    %155 = vector.shape_cast %154 : vector<8xf32> to vector<8x1xf32>
    %156 = tpu.reciprocal %155 {approx = true} : vector<8x1xf32> -> vector<8x1xf32>
    %157 = vector.broadcast %156 : vector<8x1xf32> to vector<8x8xf32>
    %158 = arith.mulf %153, %157 : vector<8x8xf32>
    %159 = arith.truncf %158 : vector<8x8xf32> to vector<8x8xbf16>
    %cst_59 = arith.constant dense<0.000000e+00> : vector<8x16xf32>
    %160 = tpu.matmul %159, %127, %cst_59 {dimension_numbers = #tpu.dot_dimension_numbers<[1], [0], [0], [1], [0, 0, 1, 1], [], []>} : vector<8x8xbf16>, vector<8x16xbf16>, vector<8x16xf32> -> vector<8x16xf32>
    %c8_60 = arith.constant 8 : index
    %c48_61 = arith.constant 48 : index
    %161 = vector.load %arg8[%c8_60, %c48_61] : memref<16x64xf32, #tpu.memory_space<vmem>>, vector<8x16xf32>
    tpu.vector_store %arg8[%c8_60, %c48_61], %160 {strides = array<i32>} : memref<16x64xf32, #tpu.memory_space<vmem>>, vector<8x16xf32>,
    %c0_62 = arith.constant 0 : index
    %c0_63 = arith.constant 0 : index
    %162 = vector.load %arg8[%c0_62, %c0_63] : memref<16x64xf32, #tpu.memory_space<vmem>>, vector<16x64xf32>
    %163 = arith.truncf %162 : vector<16x64xf32> to vector<16x64xbf16>
    %c0_64 = arith.constant 0 : index
    %c0_65 = arith.constant 0 : index
    %164 = vector.load %arg6[%c0_64, %c0_65] : memref<64x128xbf16, #tpu.memory_space<vmem>>, vector<64x128xbf16>
    %cst_66 = arith.constant dense<0.000000e+00> : vector<16x128xf32>
    %165 = tpu.matmul %163, %164, %cst_66 {dimension_numbers = #tpu.dot_dimension_numbers<[1], [0], [0], [1], [0, 0, 1, 1], [], []>} : vector<16x64xbf16>, vector<64x128xbf16>, vector<16x128xf32> -> vector<16x128xf32>
    %c0_67 = arith.constant 0 : index
    %c0_68 = arith.constant 0 : index
    %166 = vector.load %arg7[%c0_67, %c0_68] : memref<16x128xf32, #tpu.memory_space<vmem>>, vector<16x128xf32>
    tpu.vector_store %arg7[%c0_67, %c0_68], %165 {strides = array<i32>} : memref<16x128xf32, #tpu.memory_space<vmem>>, vector<16x128xf32>,
    return
  }
  func.func @transform_0(%arg0: i32) -> (i32, i32) {
    %c0_i32 = arith.constant 0 : i32
    %c0_i32_0 = arith.constant 0 : i32
    %c0_i32_1 = arith.constant 0 : i32
    return %c0_i32, %c0_i32_0 : i32, i32
  }
  func.func @transform_1(%arg0: i32) -> (i32, i32) {
    %c0_i32 = arith.constant 0 : i32
    %c0_i32_0 = arith.constant 0 : i32
    %c0_i32_1 = arith.constant 0 : i32
    return %c0_i32, %c0_i32_0 : i32, i32
  }
  func.func @transform_2(%arg0: i32) -> (i32, i32) {
    %c0_i32 = arith.constant 0 : i32
    %c0_i32_0 = arith.constant 0 : i32
    %c0_i32_1 = arith.constant 0 : i32
    return %c0_i32, %c0_i32_0 : i32, i32
  }
  func.func @transform_3(%arg0: i32) -> (i32, i32) {
    %c0_i32 = arith.constant 0 : i32
    %c0_i32_0 = arith.constant 0 : i32
    %c0_i32_1 = arith.constant 0 : i32
    return %c0_i32, %c0_i32_0 : i32, i32
  }
  func.func @transform_4(%arg0: i32) -> (i32, i32) {
    %c0_i32 = arith.constant 0 : i32
    %c0_i32_0 = arith.constant 0 : i32
    %c0_i32_1 = arith.constant 0 : i32
    return %c0_i32, %c0_i32_0 : i32, i32
  }
  func.func @transform_5(%arg0: i32) -> (i32, i32) {
    %c0_i32 = arith.constant 0 : i32
    %c0_i32_0 = arith.constant 0 : i32
    %c0_i32_1 = arith.constant 0 : i32
    return %c0_i32, %c0_i32_0 : i32, i32
  }
  func.func @transform_6(%arg0: i32) -> (i32, i32) {
    %c0_i32 = arith.constant 0 : i32
    %c0_i32_0 = arith.constant 0 : i32
    %c0_i32_1 = arith.constant 0 : i32
    return %c0_i32, %c0_i32_0 : i32, i32
  }
}

</mosaic_0001>

<bundles_post_ra>
// kernel: tpu_custom_call.1
= control target key start
LH: loop header
LB: loop body
LE: loop exit
PB: predicated region body
PF: predicated region fallthrough
CT: control target
= control target key end

     0   :  { %11 = vsyncpa [#allocation4], 0  ;;  %s2055_s0 = inlined_call_operand.hbm [shape: f32[16,64], index: 0, kind: input, shape index: {}]   ;;  %s2056_s1 = inlined_call_operand.hbm [shape: bf16[64,128], index: 1, kind: input, shape index: {}]   ;;  %s2057_s2 = inlined_call_operand.hbm [shape: bf16[64,128], index: 2, kind: input, shape index: {}]   ;;  %s2058_s3 = inlined_call_operand.hbm [shape: f32[16,128], index: 3, kind: input, shape index: {}]   ;;  %s2059_s4 = inlined_call_operand.hbm [shape: f32[16,128], index: 4, kind: input, shape index: {}]   ;;  %s2060_s5 = inlined_call_operand.hbm [shape: bf16[64,128], index: 5, kind: input, shape index: {}]   ;;  %s2061_s6 = inlined_call_operand.hbm [shape: f32[16,128], index: 6, kind: output, shape index: {}]  }
   0x1   :  { %12 = vsyncpa [#allocation7], 0 }
   0x2   :  { %13 = vsyncpa [#allocation10], 0 }
   0x3   :  { %14 = vsyncpa [#allocation13], 0 }
   0x4   :  { %15 = vsyncpa [#allocation5], 0  ;;  %s1699_s21 = smov [#allocation6]   ;;  %s1535_s25 = scalar_lea.hbm %s2056_s1, 512 }
   0x5   :  { %s33_s22 = sshll.u32 %s1699_s21, 4  ;;  %p1536_p0 = scmp.ne.s32.totalorder %s2056_s1, %s1535_s25  ;;  %s34_s22 = int_to_ptr.vmem [resolvable:$true] %s33_s22 }
   0x6   :  { %p1539_p1 = scmp.lt.u32.totalorder %s1535_s25, %s2056_s1 }
   0x8   :  { %p1541_p2 = pnand %p1539_p1, %p1536_p0 }
   0xa   :  { %1544 = shalt.err (!%p1541_p2)
}
   0xb   :  { %s1545_s30 = scalar_lea.vmem %s34_s22, 512  ;;  %p1550_p4 = scmp.lt.s32.totalorder %s34_s22, %s34_s22 }
   0xc   :  { %p1546_p3 = scmp.ne.s32.totalorder %s34_s22, %s1545_s30  ;;  %p1551_p5 = scmp.lt.s32.totalorder %s1545_s30, %s1545_s30 }
   0xe   :  { %p1552_p6 = por %p1551_p5, %p1550_p4 }
  0x10   :  { %p1553_p7 = pnand %p1552_p6, %p1546_p3 }
  0x12   :  { %1556 = shalt.err (!%p1553_p7)
}
  0x13   :  { %s1700_s7 = smov 64   ;;  %s1701_s8 = smov 4  }
  0x14   :  { %39 = dma.hbm_to_vmem [thread:$0]  %s2056_s1, 512, %s34_s22, [#allocation7], %s1700_s7, %s1700_s7, %s1701_s8  }
  0x15   :  { %s1702_s11 = smov [#allocation9]   ;;  %s1703_s13 = smov [#allocation3]  }
  0x16   :  { %s57_s12 = sshll.u32 %s1702_s11, 4  ;;  %s21_s14 = sshll.u32 %s1703_s13, 4  ;;  %s58_s12 = int_to_ptr.vmem [resolvable:$true] %s57_s12  ;;  %s22_s14 = int_to_ptr.vmem [resolvable:$true] %s21_s14 }
  0x17   :  { %s1557_s17 = scalar_lea.hbm %s2058_s3, 256 }
  0x18   :  { %p1558_p8 = scmp.ne.s32.totalorder %s2058_s3, %s1557_s17  ;;  %p1561_p9 = scmp.lt.u32.totalorder %s1557_s17, %s2058_s3 }
  0x1a   :  { %p1563_p10 = pnand %p1561_p9, %p1558_p8 }
  0x1c   :  { %1566 = shalt.err (!%p1563_p10)
}
  0x1d   :  { %s1567_s1 = scalar_lea.vmem %s58_s12, 256  ;;  %p1572_p12 = scmp.lt.s32.totalorder %s58_s12, %s58_s12 }
  0x1e   :  { %p1568_p11 = scmp.ne.s32.totalorder %s58_s12, %s1567_s1  ;;  %p1573_p13 = scmp.lt.s32.totalorder %s1567_s1, %s1567_s1 }
  0x20   :  { %p1574_p0 = por %p1573_p13, %p1572_p12 }
  0x22   :  { %p1575_p1 = pnand %p1574_p0, %p1568_p11 }
  0x24   :  { %1578 = shalt.err (!%p1575_p1)
}
  0x25   :  { %s1704_s22 = smov 128   ;;  %s1705_s23 = smov 8  }
  0x26   :  { %63 = dma.hbm_to_vmem [thread:$0]  %s2058_s3, 256, %s58_s12, [#allocation10], %s1704_s22, %s1704_s22, %s1705_s23  }
  0x27   :  { %s1579_s28 = scalar_lea.hbm %s2055_s0, 256 }
  0x28   :  { %p1580_p2 = scmp.ne.s32.totalorder %s2055_s0, %s1579_s28  ;;  %p1583_p3 = scmp.lt.u32.totalorder %s1579_s28, %s2055_s0 }
  0x2a   :  { %p1585_p4 = pnand %p1583_p3, %p1580_p2 }
  0x2c   :  { %1588 = shalt.err (!%p1585_p4)
}
  0x2d   :  { %s1589_s11 = scalar_lea.vmem %s22_s14, 256  ;;  %p1594_p6 = scmp.lt.s32.totalorder %s22_s14, %s22_s14 }
  0x2e   :  { %p1590_p5 = scmp.ne.s32.totalorder %s22_s14, %s1589_s11  ;;  %p1595_p7 = scmp.lt.s32.totalorder %s1589_s11, %s1589_s11 }
  0x30   :  { %p1596_p8 = por %p1595_p7, %p1594_p6 }
  0x32   :  { %p1597_p9 = pnand %p1596_p8, %p1590_p5 }
  0x34   :  { %1600 = shalt.err (!%p1597_p9)
}
  0x35   :  { %27 = dma.hbm_to_vmem [thread:$0]  %s2055_s0, 256, %s22_s14, [#allocation4], %s1704_s22, %s1704_s22, %s1705_s23  }
  0x36   :  { %s1706_s13 = smov [#allocation8]   ;;  %s1707_s16 = smov [#allocation11]  }
  0x37   :  { %s45_s15 = sshll.u32 %s1706_s13, 4  ;;  %s69_s17 = sshll.u32 %s1707_s16, 4  ;;  %s46_s15 = int_to_ptr.vmem [resolvable:$true] %s45_s15  ;;  %s70_s17 = int_to_ptr.vmem [resolvable:$true] %s69_s17 }
  0x38   :  { %s1601_s20 = scalar_lea.hbm %s2057_s2, 512 }
  0x39   :  { %p1602_p10 = scmp.ne.s32.totalorder %s2057_s2, %s1601_s20  ;;  %p1605_p11 = scmp.lt.u32.totalorder %s1601_s20, %s2057_s2 }
  0x3b   :  { %p1607_p12 = pnand %p1605_p11, %p1602_p10 }
  0x3d   :  { %1610 = shalt.err (!%p1607_p12)
}
  0x3e   :  { %s1611_s0 = scalar_lea.vmem %s46_s15, 512  ;;  %p1616_p0 = scmp.lt.s32.totalorder %s46_s15, %s46_s15 }
  0x3f   :  { %p1612_p13 = scmp.ne.s32.totalorder %s46_s15, %s1611_s0  ;;  %p1617_p1 = scmp.lt.s32.totalorder %s1611_s0, %s1611_s0 }
  0x41   :  { %p1618_p2 = por %p1617_p1, %p1616_p0 }
  0x43   :  { %p1619_p3 = pnand %p1618_p2, %p1612_p13 }
  0x45   :  { %1622 = shalt.err (!%p1619_p3)
}
  0x46   :  { %51 = dma.hbm_to_vmem [thread:$0]  %s2057_s2, 512, %s46_s15, [#allocation7], %s1700_s7, %s1700_s7, %s1701_s8  }
  0x47   :  { %s1623_s29 = scalar_lea.hbm %s2059_s4, 256 }
  0x48   :  { %p1624_p4 = scmp.ne.s32.totalorder %s2059_s4, %s1623_s29  ;;  %p1627_p5 = scmp.lt.u32.totalorder %s1623_s29, %s2059_s4 }
  0x4a   :  { %p1629_p6 = pnand %p1627_p5, %p1624_p4 }
  0x4c   :  { %1632 = shalt.err (!%p1629_p6)
}
  0x4d   :  { %s1633_s3 = scalar_lea.vmem %s70_s17, 256  ;;  %p1638_p8 = scmp.lt.s32.totalorder %s70_s17, %s70_s17 }
  0x4e   :  { %p1634_p7 = scmp.ne.s32.totalorder %s70_s17, %s1633_s3  ;;  %p1639_p9 = scmp.lt.s32.totalorder %s1633_s3, %s1633_s3 }
  0x50   :  { %p1640_p10 = por %p1639_p9, %p1638_p8 }
  0x52   :  { %p1641_p11 = pnand %p1640_p10, %p1634_p7 }
  0x54   :  { %1644 = shalt.err (!%p1641_p11)
}
  0x55   :  { %75 = dma.hbm_to_vmem [thread:$0]  %s2059_s4, 256, %s70_s17, [#allocation10], %s1704_s22, %s1704_s22, %s1705_s23  }
  0x56   :  { %s1708_s13 = smov [#allocation12]   ;;  %s1645_s19 = scalar_lea.hbm %s2060_s5, 512 }
  0x57   :  { %s81_s15 = sshll.u32 %s1708_s13, 4  ;;  %p1646_p12 = scmp.ne.s32.totalorder %s2060_s5, %s1645_s19  ;;  %s82_s15 = int_to_ptr.vmem [resolvable:$true] %s81_s15 }
  0x58   :  { %p1649_p13 = scmp.lt.u32.totalorder %s1645_s19, %s2060_s5 }
  0x5a   :  { %p1651_p0 = pnand %p1649_p13, %p1646_p12 }
  0x5c   :  { %1654 = shalt.err (!%p1651_p0)
}
  0x5d   :  { %s1655_s25 = scalar_lea.vmem %s82_s15, 512  ;;  %p1660_p2 = scmp.lt.s32.totalorder %s82_s15, %s82_s15 }
  0x5e   :  { %p1656_p1 = scmp.ne.s32.totalorder %s82_s15, %s1655_s25  ;;  %p1661_p3 = scmp.lt.s32.totalorder %s1655_s25, %s1655_s25 }
  0x60   :  { %p1662_p4 = por %p1661_p3, %p1660_p2 }
  0x62   :  { %p1663_p5 = pnand %p1662_p4, %p1656_p1 }
  0x64   :  { %1666 = shalt.err (!%p1663_p5)
}
  0x65   :  { %87 = dma.hbm_to_vmem [thread:$0]  %s2060_s5, 512, %s82_s15, [#allocation13], %s1700_s7, %s1700_s7, %s1701_s8  }
  0x66   :  { %1689 = dma.done.wait [#allocation4], 256  }
  0x67   :  { %1690 = vsyncadd [#allocation4], 4294967040 }
  0x68   :  { %1691 = dma.done.wait [#allocation7], 1024  }
  0x69   :  { %1692 = vsyncadd [#allocation7], 4294966272 }
  0x6a   :  { %1693 = dma.done.wait [#allocation10], 512  }
  0x6b   :  { %1694 = vsyncadd [#allocation10], 4294966784 }
  0x6c   :  { %1695 = dma.done.wait [#allocation13], 512  }
  0x6d   :  { %1696 = vsyncadd [#allocation13], 4294966784  ;;  %v1709_v0 = vmov 0.0   ;;  %vm1710_vm0 = vmmov 0   ;;  %v1491_v1 = vld [vmem:[#allocation6] sm:$0xff]   ;;  %v1493_v3 = vld [vmem:[#allocation6 + $0x8] sm:$0xff]   ;;  %v270_v46 = vlaneseq }
  0x6e   :  { %1340 = vmatprep.subr.bf16.mxu0 %v1709_v0  ;;  %1352 = vmatprep.subr.bf16.mxu1 %v1709_v0  ;;  %v1492_v2 = vld [vmem:[#allocation8] sm:$0xff]   ;;  %v1494_v4 = vld [vmem:[#allocation8 + $0x8] sm:$0xff]   ;;  %v1495_v5 = vld [vmem:[#allocation6 + $0x10] sm:$0xff]   ;;  %vm142_vm1 = vcmask 523264   ;;  %s1711_s5 = smov 48   ;;  %s1712_s8 = smov 96  }
  0x6f   :  { %1348 = vmatprep.mubr.msk.bf16.mxu0 %vm1710_vm0, %v1709_v0  ;;  %1360 = vmatprep.mubr.msk.bf16.mxu1 %vm1710_vm0, %v1709_v0  ;;  %v1496_v6 = vld [vmem:[#allocation8 + $0x10] sm:$0xff]   ;;  %v1497_v7 = vld [vmem:[#allocation6 + $0x18] sm:$0xff]   ;;  %v260_v12 = vld [vmem:[#allocation9] sm:$0xff]  ;;  %s1713_s0 = smov 112   ;;  %s1714_s14 = smov 80   ;;  %vm279_vm2 = vcmask 130048  }
  0x70   :  { %1341 = vmatpush3.bf16.msra.mxu0 %v1491_v1  ;;  %1353 = vmatpush3.bf16.msra.mxu1 %v1492_v2  ;;  %v107_v8 = vld [vmem:[#allocation3] sm:$0xff]  ;;  %v108_v9 = vld [vmem:[#allocation3 + $0x8] sm:$0xff]  ;;  %v261_v15 = vld [vmem:[#allocation9 + $0x8] sm:$0xff]  ;;  %v271_v47 = vshrl.u32 %v270_v46, 7  ;;  %v273_v48 = vand.u32 127, %v270_v46  ;;  %vm327_vm4 = vcmask 64512  }
  0x71   :  { %1342 = vmatprep.subr.bf16.mxu0 %v1709_v0  ;;  %1354 = vmatprep.subr.bf16.mxu1 %v1709_v0  ;;  %v1498_v10 = vld [vmem:[#allocation8 + $0x18] sm:$0xff]   ;;  %v109_v11 = vpack.c.bf16 %v108_v9, %v107_v8  ;;  %v264_v13 = vld [vmem:[#allocation11] sm:$0xff]  ;;  %s1716_s26 = smov 16   ;;  %vm345_vm5 = vcmask 1043456   ;;  %vm495_vm6 = vcmask 261248   ;;  %vm612_vm7 = vcmask 392448  }
  0x72   :  { %v265_v19 = vld [vmem:[#allocation11 + $0x8] sm:$0xff]  ;;  %vm1919_vm3 = vcmp.le.s32.totalorder %v273_v48, %v271_v47  ;;  %vm719_vm8 = vcmask 523648   ;;  %s1717_s27 = smov [#allocation14]  }
  0x73   :  { %s1247_s28 = sshll.u32 %s1717_s27, 4  ;;  %s1248_s28 = int_to_ptr.vmem [resolvable:$true] %s1247_s28 }
  0x74   :  { %1343 = vmatpush3.bf16.msra.mxu0 %v1493_v3  ;;  %1355 = vmatpush3.bf16.msra.mxu1 %v1494_v4  ;;  %s1667_s29 = scalar_lea.vmem %s1248_s28, 256  ;;  %p1672_p7 = scmp.lt.s32.totalorder %s1248_s28, %s1248_s28 }
  0x75   :  { %1344 = vmatprep.subr.bf16.mxu0 %v1709_v0  ;;  %1356 = vmatprep.subr.bf16.mxu1 %v1709_v0  ;;  %p1668_p6 = scmp.ne.s32.totalorder %s1248_s28, %s1667_s29  ;;  %p1673_p8 = scmp.lt.s32.totalorder %s1667_s29, %s1667_s29 }
  0x77   :  { %p1674_p9 = por %p1673_p8, %p1672_p7 }
  0x78   :  { %1345 = vmatpush3.bf16.msra.mxu0 %v1495_v5  ;;  %1357 = vmatpush3.bf16.msra.mxu1 %v1496_v6 }
  0x79   :  { %1346 = vmatprep.subr.bf16.mxu0 %v1709_v0  ;;  %1358 = vmatprep.subr.bf16.mxu1 %v1709_v0  ;;  %p1675_p10 = pnand %p1674_p9, %p1668_p6 }
  0x7c   :  { %1347 = vmatpush3.bf16.msra.mxu0 %v1497_v7  ;;  %1359 = vmatpush3.bf16.msra.mxu1 %v1498_v10 }
  0x7d   :  { %1376 = vmatprep.subr.bf16.mxu0 %v1709_v0  ;;  %1364 = vmatprep.subr.bf16.mxu1 %v1709_v0 }
  0x7f   :  { %1349 = vmatmul.mubr.msk.bf16.vlgmr.msra.gmra.mrb[0].mxu0 %vm142_vm1, %v109_v11  ;;  %1361 = vmatmul.mubr.msk.bf16.vlgmr.msra.gmra.mrb[0].mxu1 %vm142_vm1, %v109_v11 }
  0x80   :  { %1378 = vmatprep.mubr.msk.bf16.mxu0 %vm1710_vm0, %v1709_v0  ;;  %1366 = vmatprep.mubr.msk.bf16.mxu1 %vm1710_vm0, %v1709_v0 }
 0x152   :  { %v180_v14 = vpop.f32.mrb[0].mxu0  ;;  %v253_v17 = vpop.f32.mrb[0].mxu1 }
 0x153   :  { %v262_v16 = vmul.f32 %v260_v12, %v180_v14  ;;  %v1350_v18 = vpop.f32.mrb[1].mxu0  ;;  %v266_v20 = vmul.f32 %v264_v13, %v253_v17  ;;  %v1362_v21 = vpop.f32.mrb[1].mxu1 }
 0x154   :  { %v183_v22 = vpop.f32.mrb[2].mxu0  ;;  %v256_v24 = vpop.f32.mrb[2].mxu1 }
 0x155   :  { %v263_v23 = vmul.f32 %v261_v15, %v183_v22  ;;  %v1351_v25 = vpop.f32.mrb[3].mxu0  ;;  %v268_v26 = vadd.f32 %v266_v20, %v262_v16  ;;  %v267_v27 = vmul.f32 %v265_v19, %v256_v24  ;;  %v1363_v28 = vpop.f32.mrb[3].mxu1 }
 0x157   :  { %v1863_v29 = vpack.c.bf16 %v268_v26, %v268_v26  ;;  %v269_v30 = vadd.f32 %v267_v27, %v263_v23 }
 0x159   :  { %499 = vrot.lane.b32.xlu1 %v1863_v29, %s1711_s5  ;;  %277 = vrot.lane.b32.xlu0 %v1863_v29, %s1700_s7  ;;  %v1871_v31 = vpack.c.bf16 %v269_v30, %v269_v30 }
 0x15d   :  { %497 = vrot.lane.b32.xlu1 %v1863_v29, %s1712_s8  ;;  %390 = vrot.lane.b32.xlu0 %v1863_v29, %s1713_s0 }
 0x161   :  { %614 = vrot.lane.b32.xlu0 %v1863_v29, %s1714_s14  ;;  %723 = vrot.lane.b32.xlu1 %v1871_v31, %s1700_s7  ;;  %s1715_s7 = smov 32  }
 0x165   :  { %833 = vrot.lane.b32.xlu0 %v1871_v31, %s1713_s0  ;;  %941 = vrot.lane.b32.xlu1 %v1871_v31, %s1711_s5 }
 0x169   :  { %939 = vrot.lane.b32.xlu0 %v1871_v31, %s1712_s8  ;;  %1055 = vrot.lane.b32.xlu1 %v1871_v31, %s1714_s14 }
 0x1cb   :  { %v278_v32 = vpop.permute.xlu0 %277  ;;  %v500_v34 = vpop.permute.xlu1 %499 }
 0x1cc   :  { %v284_v33 = vsel %vm279_vm2, %v278_v32, 0  ;;  %v505_v36 = vsel %vm279_vm2, %v500_v34, 0 }
 0x1cd   :  { %1365 = vmatpush3.bf16.xpose.msra.mxu1 %v284_v33  ;;  %1377 = vmatpush3.bf16.xpose.msra.mxu0 %v284_v33 }
 0x1ce   :  { %1388 = vmatprep.subr.bf16.mxu0 %v1709_v0  ;;  %1370 = vmatprep.subr.bf16.mxu1 %v1709_v0 }
 0x1cf   :  { %v391_v35 = vpop.permute.xlu0 %390  ;;  %v498_v37 = vpop.permute.xlu1 %497 }
 0x1d3   :  { %v724_v38 = vpop.permute.xlu1 %723  ;;  %v615_v39 = vpop.permute.xlu0 %614 }
 0x1d4   :  { %1367 = vmatmul.mubr.msk.bf16.vlgmr.msra.gmra.mrb[4].mxu1 %vm279_vm2, %v1863_v29  ;;  %1379 = vmatmul.mubr.msk.bf16.vlgmr.msra.gmra.mrb[4].mxu0 %vm279_vm2, %v391_v35  ;;  %v729_v40 = vsel %vm279_vm2, %v724_v38, 0 }
 0x1d5   :  { %1389 = vmatpush3.bf16.xpose.msra.mxu0 %v505_v36  ;;  %1390 = vmatprep.mubr.msk.bf16.mxu0 %vm1710_vm0, %v1709_v0 }
 0x1d6   :  { %1400 = vmatprep.subr.bf16.mxu0 %v1709_v0  ;;  %1372 = vmatprep.mubr.msk.bf16.mxu1 %vm1710_vm0, %v1709_v0 }
 0x1d7   :  { %v942_v41 = vpop.permute.xlu1 %941  ;;  %v834_v42 = vpop.permute.xlu0 %833 }
 0x1d8   :  { %v947_v43 = vsel %vm279_vm2, %v942_v41, 0 }
 0x1db   :  { %v940_v44 = vpop.permute.xlu0 %939  ;;  %v1056_v45 = vpop.permute.xlu1 %1055 }
 0x1dc   :  { %1391 = vmatmul.mubr.msk.bf16.vlgmr.msra.gmra.mrb[8].mxu0 %vm279_vm2, %v498_v37 }
 0x1dd   :  { %1401 = vmatpush3.bf16.xpose.msra.mxu0 %v505_v36  ;;  %1402 = vmatprep.mubr.msk.bf16.mxu0 %vm1710_vm0, %v1709_v0 }
 0x1de   :  { %1412 = vmatprep.subr.bf16.mxu0 %v1709_v0 }
 0x1e4   :  { %1403 = vmatmul.mubr.msk.bf16.vlgmr.msra.gmra.mrb[12].mxu0 %vm279_vm2, %v615_v39 }
 0x1e5   :  { %1413 = vmatpush3.bf16.xpose.msra.mxu0 %v729_v40  ;;  %1414 = vmatprep.mubr.msk.bf16.mxu0 %vm1710_vm0, %v1709_v0 }
 0x1e6   :  { %1424 = vmatprep.subr.bf16.mxu0 %v1709_v0 }
 0x1ec   :  { %1415 = vmatmul.mubr.msk.bf16.vlgmr.msra.gmra.mrb[16].mxu0 %vm279_vm2, %v1871_v31 }
 0x1ed   :  { %1425 = vmatpush3.bf16.xpose.msra.mxu0 %v729_v40  ;;  %1426 = vmatprep.mubr.msk.bf16.mxu0 %vm1710_vm0, %v1709_v0 }
 0x1ee   :  { %1436 = vmatprep.subr.bf16.mxu0 %v1709_v0 }
 0x1f4   :  { %1427 = vmatmul.mubr.msk.bf16.vlgmr.msra.gmra.mrb[20].mxu0 %vm279_vm2, %v834_v42 }
 0x1f5   :  { %1437 = vmatpush3.bf16.xpose.msra.mxu0 %v947_v43  ;;  %1438 = vmatprep.mubr.msk.bf16.mxu0 %vm1710_vm0, %v1709_v0 }
 0x1f6   :  { %1448 = vmatprep.subr.bf16.mxu0 %v1709_v0 }
 0x1fc   :  { %1439 = vmatmul.mubr.msk.bf16.vlgmr.msra.gmra.mrb[24].mxu0 %vm279_vm2, %v940_v44 }
 0x1fd   :  { %1449 = vmatpush3.bf16.xpose.msra.mxu0 %v947_v43  ;;  %1450 = vmatprep.mubr.msk.bf16.mxu0 %vm1710_vm0, %v1709_v0 }
 0x1fe   :  { %1460 = vmatprep.subr.bf16.mxu0 %v1709_v0 }
 0x204   :  { %1451 = vmatmul.mubr.msk.bf16.vlgmr.msra.gmra.mrb[28].mxu0 %vm279_vm2, %v1056_v45 }
 0x205   :  { %1468 = vmatprep.mubr.msk.bf16.mxu0 %vm1710_vm0, %v1709_v0 }
 0x2a7   :  { %v320_v50 = vpop.f32.mrb[4].mxu1  ;;  %v429_v51 = vpop.f32.mrb[4].mxu0 }
 0x2a8   :  { %v326_v52 = vsel %vm1919_vm3, %v320_v50, -3.4028235e+38  ;;  %v435_v53 = vsel %vm1919_vm3, %v429_v51, -3.4028235e+38  ;;  %v1368_v54 = vpop.f32.mrb[5].mxu1  ;;  %v1380_v55 = vpop.f32.mrb[5].mxu0 }
 0x2a9   :  { %v323_v56 = vpop.f32.mrb[6].mxu1  ;;  %v432_v57 = vpop.f32.mrb[6].mxu0  ;;  %v328_v58 = vsel %vm327_vm4, %v326_v52, -inf  ;;  %v436_v59 = vsel %vm327_vm4, %v435_v53, -inf }
 0x2aa   :  { %v1369_v60 = vpop.f32.mrb[7].mxu1  ;;  %329 = vmax.xlane.f32.xlu0 %v328_v58  ;;  %437 = vmax.xlane.f32.xlu1 %v436_v59  ;;  %v1381_v61 = vpop.f32.mrb[7].mxu0 }
 0x2af   :  { %v541_v62 = vpop.f32.mrb[8].mxu0 }
 0x2b0   :  { %v547_v63 = vsel %vm1919_vm3, %v541_v62, -3.4028235e+38  ;;  %v1392_v1 = vpop.f32.mrb[9].mxu0 }
 0x2b1   :  { %v544_v2 = vpop.f32.mrb[10].mxu0  ;;  %v548_v3 = vsel %vm327_vm4, %v547_v63, -inf }
 0x2b2   :  { %549 = vmax.xlane.f32.xlu0 %v548_v3  ;;  %v1393_v4 = vpop.f32.mrb[11].mxu0 }
 0x2b7   :  { %v653_v5 = vpop.f32.mrb[12].mxu0 }
 0x2b8   :  { %v659_v6 = vsel %vm1919_vm3, %v653_v5, -3.4028235e+38  ;;  %v1404_v7 = vpop.f32.mrb[13].mxu0 }
 0x2b9   :  { %v656_v8 = vpop.f32.mrb[14].mxu0  ;;  %v660_v9 = vsel %vm327_vm4, %v659_v6, -inf }
 0x2ba   :  { %661 = vmax.xlane.f32.xlu0 %v660_v9  ;;  %v1405_v10 = vpop.f32.mrb[15].mxu0 }
 0x2bf   :  { %v765_v11 = vpop.f32.mrb[16].mxu0 }
 0x2c0   :  { %v771_v12 = vsel %vm1919_vm3, %v765_v11, -3.4028235e+38  ;;  %v1416_v13 = vpop.f32.mrb[17].mxu0 }
 0x2c1   :  { %v768_v14 = vpop.f32.mrb[18].mxu0  ;;  %v772_v15 = vsel %vm327_vm4, %v771_v12, -inf }
 0x2c2   :  { %773 = vmax.xlane.f32.xlu1 %v772_v15  ;;  %v1417_v16 = vpop.f32.mrb[19].mxu0 }
 0x2c7   :  { %v872_v17 = vpop.f32.mrb[20].mxu0 }
 0x2c8   :  { %v1940_v18 = vsel %vm1919_vm3, %v872_v17, -3.4028235e+38  ;;  %v1428_v19 = vpop.f32.mrb[21].mxu0 }
 0x2c9   :  { %v875_v20 = vpop.f32.mrb[22].mxu0  ;;  %v879_v21 = vsel %vm327_vm4, %v1940_v18, -inf }
 0x2ca   :  { %880 = vmax.xlane.f32.xlu0 %v879_v21  ;;  %v1429_v22 = vpop.f32.mrb[23].mxu0 }
 0x2cf   :  { %v983_v23 = vpop.f32.mrb[24].mxu0 }
 0x2d0   :  { %v989_v24 = vsel %vm1919_vm3, %v983_v23, -3.4028235e+38  ;;  %v1440_v25 = vpop.f32.mrb[25].mxu0 }
 0x2d1   :  { %v986_v26 = vpop.f32.mrb[26].mxu0  ;;  %v990_v27 = vsel %vm327_vm4, %v989_v24, -inf }
 0x2d2   :  { %991 = vmax.xlane.f32.xlu1 %v990_v27  ;;  %v1441_v28 = vpop.f32.mrb[27].mxu0 }
 0x2d7   :  { %v1094_v30 = vpop.f32.mrb[28].mxu0 }
 0x2d8   :  { %v1100_v32 = vsel %vm1919_vm3, %v1094_v30, -3.4028235e+38  ;;  %v1452_v33 = vpop.f32.mrb[29].mxu0 }
 0x2d9   :  { %v1097_v34 = vpop.f32.mrb[30].mxu0  ;;  %v1101_v35 = vsel %vm327_vm4, %v1100_v32, -inf }
 0x2da   :  { %1102 = vmax.xlane.f32.xlu0 %v1101_v35  ;;  %v1453_v36 = vpop.f32.mrb[31].mxu0 }
 0x337   :  { %v330_v37 = vpop.xlane.xlu0 %329  ;;  %v438_v38 = vpop.xlane.xlu1 %437 }
 0x338   :  { %v331_v39 = vsub.f32 %v326_v52, %v330_v37  ;;  %v439_v40 = vsub.f32 %v435_v53, %v438_v38 }
 0x33a   :  { %v332_v41 = vmul.f32 1.442695, %v331_v39  ;;  %v440_v42 = vmul.f32 1.442695, %v439_v40 }
 0x33c   :  { %1503 = vpow2.f32 %v332_v41 }
 0x33d   :  { %1505 = vpow2.f32 %v440_v42 }
 0x33f   :  { %v550_v43 = vpop.xlane.xlu0 %549 }
 0x340   :  { %v551_v44 = vsub.f32 %v547_v63, %v550_v43 }
 0x342   :  { %v552_v45 = vmul.f32 1.442695, %v551_v44 }
 0x344   :  { %1507 = vpow2.f32 %v552_v45 }
 0x346   :  { %v1504_v46 = vpop.eup %1503 }
 0x347   :  { %v1950_v47 = vpop.eup %1505  ;;  %v662_v48 = vpop.xlane.xlu0 %661  ;;  %v334_v49 = vsel %vm327_vm4, %v1504_v46, 0.0 }
 0x348   :  { %v663_v50 = vsub.f32 %v659_v6, %v662_v48  ;;  %335 = vadd.xlane.f32.xlu1 %v334_v49  ;;  %v442_v51 = vsel %vm327_vm4, %v1950_v47, 0.0 }
 0x349   :  { %443 = vadd.xlane.f32.xlu0 %v442_v51 }
 0x34a   :  { %v664_v52 = vmul.f32 1.442695, %v663_v50 }
 0x34c   :  { %1509 = vpow2.f32 %v664_v52 }
 0x34e   :  { %v1955_v53 = vpop.eup %1507 }
 0x34f   :  { %v774_v54 = vpop.xlane.xlu1 %773  ;;  %v554_v55 = vsel %vm327_vm4, %v1955_v53, 0.0 }
 0x350   :  { %v775_v56 = vsub.f32 %v771_v12, %v774_v54  ;;  %555 = vadd.xlane.f32.xlu1 %v554_v55 }
 0x352   :  { %v776_v57 = vmul.f32 1.442695, %v775_v56 }
 0x354   :  { %1511 = vpow2.f32 %v776_v57 }
 0x356   :  { %v1959_v58 = vpop.eup %1509 }
 0x357   :  { %v666_v59 = vsel %vm327_vm4, %v1959_v58, 0.0  ;;  %v881_v2 = vpop.xlane.xlu0 %880 }
 0x358   :  { %667 = vadd.xlane.f32.xlu0 %v666_v59  ;;  %v882_v3 = vsub.f32 %v1940_v18, %v881_v2 }
 0x35a   :  { %v883_v6 = vmul.f32 1.442695, %v882_v3 }
 0x35e   :  { %v1963_v60 = vpop.eup %1511 }
 0x35f   :  { %v778_v61 = vsel %vm327_vm4, %v1963_v60, 0.0  ;;  %v992_v62 = vpop.xlane.xlu1 %991 }
 0x360   :  { %779 = vadd.xlane.f32.xlu0 %v778_v61  ;;  %v993_v63 = vsub.f32 %v989_v24, %v992_v62 }
 0x361   :  { %340 = vrot.lane.b32.xlu1 %v1863_v29, %s1715_s7 }
 0x362   :  { %v994_v1 = vmul.f32 1.442695, %v993_v63 }
 0x364   :  { %1513 = vpow2.f32 %v994_v1 }
 0x365   :  { %1515 = vpow2.f32 %v883_v6 }
 0x367   :  { %v1103_v4 = vpop.xlane.xlu0 %1102 }
 0x368   :  { %v1104_v7 = vsub.f32 %v1100_v32, %v1103_v4 }
 0x36a   :  { %v1105_v9 = vmul.f32 1.442695, %v1104_v7 }
 0x36c   :  { %1517 = vpow2.f32 %v1105_v9 }
 0x36e   :  { %v1972_v5 = vpop.eup %1513 }
 0x36f   :  { %v996_v8 = vsel %vm327_vm4, %v1972_v5, 0.0  ;;  %v1976_v10 = vpop.eup %1515 }
 0x376   :  { %560 = vrot.lane.b32.xlu0 %v1863_v29, %s1716_s26  ;;  %v885_v29 = vsel %vm327_vm4, %v1976_v10, 0.0  ;;  %v1980_v11 = vpop.eup %1517 }
 0x377   :  { %v1107_v12 = vsel %vm327_vm4, %v1980_v11, 0.0 }
 0x385   :  { %997 = vadd.xlane.f32.xlu1 %v996_v8 }
 0x395   :  { %886 = vadd.xlane.f32.xlu0 %v885_v29  ;;  %v1499_v29 = vld [vmem:[#allocation12] sm:$0xff]  }
 0x396   :  { %784 = vrot.lane.b32.xlu1 %v1871_v31, %s1715_s7  ;;  %1461 = vmatpush3.bf16.msra.mxu0 %v1499_v29 }
 0x397   :  { %1462 = vmatprep.subr.bf16.mxu0 %v1709_v0 }
 0x399   :  { %1108 = vadd.xlane.f32.xlu0 %v1107_v12 }
 0x3af   :  { %1002 = vrot.lane.b32.xlu0 %v1871_v31, %s1716_s26 }
 0x3d5   :  { %v336_v13 = vpop.xlane.xlu1 %335 }
 0x3d6   :  { %1519 = vrcp.f32 %v336_v13  ;;  %v444_v14 = vpop.xlane.xlu0 %443 }
 0x3d7   :  { %1521 = vrcp.f32 %v444_v14 }
 0x3dd   :  { %v556_v15 = vpop.xlane.xlu1 %555 }
 0x3de   :  { %1523 = vrcp.f32 %v556_v15 }
 0x3e0   :  { %v1520_v16 = vpop.eup %1519 }
 0x3e1   :  { %v338_v17 = vmul.f32 %v1520_v16, %v1504_v46  ;;  %v341_v18 = vpop.permute.xlu1 %340  ;;  %v1522_v21 = vpop.eup %1521  ;;  %v1501_v16 = vld [vmem:[#allocation12 + $0x10] sm:$0xff]  }
 0x3e2   :  { %v347_v19 = vsel %vm345_vm5, %v341_v18, 0  ;;  %v446_v31 = vmul.f32 %v1522_v21, %v1950_v47 }
 0x3e3   :  { %1371 = vmatpush3.bf16.msra.mxu1 %v347_v19  ;;  %v339_v20 = vpack.c.bf16 %v338_v17, %v338_v17  ;;  %v1502_v17 = vld [vmem:[#allocation12 + $0x18] sm:$0xff]  }
 0x3e4   :  { %1382 = vmatprep.subr.bf16.mxu1 %v1709_v0  ;;  %v447_v23 = vpack.c.bf16 %v446_v31, %v446_v31 }
 0x3e5   :  { %v668_v22 = vpop.xlane.xlu0 %667 }
 0x3e6   :  { %1373 = vmatmul.mubr.msk.bf16.vlgmr.msra.gmra.mrb[8].mxu1 %vm327_vm4, %v339_v20  ;;  %1525 = vrcp.f32 %v668_v22 }
 0x3e7   :  { %1383 = vmatpush3.bf16.msra.mxu1 %v347_v19  ;;  %1384 = vmatprep.mubr.msk.bf16.mxu1 %vm1710_vm0, %v1709_v0 }
 0x3e8   :  { %1394 = vmatprep.subr.bf16.mxu1 %v1709_v0  ;;  %v1524_v24 = vpop.eup %1523 }
 0x3e9   :  { %v558_v26 = vmul.f32 %v1524_v24, %v1955_v53 }
 0x3eb   :  { %v559_v30 = vpack.c.bf16 %v558_v26, %v558_v26 }
 0x3ed   :  { %v780_v25 = vpop.xlane.xlu0 %779 }
 0x3ee   :  { %1385 = vmatmul.mubr.msk.bf16.vlgmr.msra.gmra.mrb[12].mxu1 %vm327_vm4, %v447_v23  ;;  %1527 = vrcp.f32 %v780_v25 }
 0x3ef   :  { %1396 = vmatprep.mubr.msk.bf16.mxu1 %vm1710_vm0, %v1709_v0 }
 0x3f0   :  { %v1526_v32 = vpop.eup %1525 }
 0x3f1   :  { %v561_v27 = vpop.permute.xlu0 %560  ;;  %v670_v33 = vmul.f32 %v1526_v32, %v1959_v58 }
 0x3f2   :  { %v566_v28 = vsel %vm345_vm5, %v561_v27, 0 }
 0x3f3   :  { %1395 = vmatpush3.bf16.msra.mxu1 %v566_v28  ;;  %v671_v34 = vpack.c.bf16 %v670_v33, %v670_v33 }
 0x3f4   :  { %1406 = vmatprep.subr.bf16.mxu1 %v1709_v0 }
 0x3f6   :  { %1397 = vmatmul.mubr.msk.bf16.vlgmr.msra.gmra.mrb[16].mxu1 %vm327_vm4, %v559_v30 }
 0x3f7   :  { %1407 = vmatpush3.bf16.msra.mxu1 %v566_v28  ;;  %1408 = vmatprep.mubr.msk.bf16.mxu1 %vm1710_vm0, %v1709_v0 }
 0x3f8   :  { %1418 = vmatprep.subr.bf16.mxu1 %v1709_v0  ;;  %v1528_v35 = vpop.eup %1527 }
 0x3f9   :  { %v782_v37 = vmul.f32 %v1528_v35, %v1963_v60 }
 0x3fb   :  { %v783_v40 = vpack.c.bf16 %v782_v37, %v782_v37 }
 0x3fe   :  { %1409 = vmatmul.mubr.msk.bf16.vlgmr.msra.gmra.mrb[20].mxu1 %vm327_vm4, %v671_v34 }
 0x3ff   :  { %1420 = vmatprep.mubr.msk.bf16.mxu1 %vm1710_vm0, %v1709_v0 }
 0x412   :  { %v998_v36 = vpop.xlane.xlu1 %997 }
 0x416   :  { %v785_v38 = vpop.permute.xlu1 %784 }
 0x417   :  { %v790_v39 = vsel %vm345_vm5, %v785_v38, 0 }
 0x418   :  { %1419 = vmatpush3.bf16.msra.mxu1 %v790_v39 }
 0x419   :  { %1430 = vmatprep.subr.bf16.mxu1 %v1709_v0 }
 0x41b   :  { %1421 = vmatmul.mubr.msk.bf16.vlgmr.msra.gmra.mrb[24].mxu1 %vm327_vm4, %v783_v40 }
 0x41c   :  { %1431 = vmatpush3.bf16.msra.mxu1 %v790_v39  ;;  %1432 = vmatprep.mubr.msk.bf16.mxu1 %vm1710_vm0, %v1709_v0 }
 0x41d   :  { %1442 = vmatprep.subr.bf16.mxu1 %v1709_v0 }
 0x422   :  { %v887_v41 = vpop.xlane.xlu0 %886 }
 0x423   :  { %1529 = vrcp.f32 %v887_v41 }
 0x424   :  { %1531 = vrcp.f32 %v998_v36 }
 0x426   :  { %v1109_v42 = vpop.xlane.xlu0 %1108 }
 0x427   :  { %1533 = vrcp.f32 %v1109_v42 }
 0x42a   :  { %v1003_v45 = vpop.permute.xlu0 %1002 }
 0x42b   :  { %v1008_v48 = vsel %vm345_vm5, %v1003_v45, 0 }
 0x42d   :  { %v1530_v43 = vpop.eup %1529 }
 0x42e   :  { %v889_v44 = vmul.f32 %v1530_v43, %v1976_v10  ;;  %v1532_v47 = vpop.eup %1531 }
 0x42f   :  { %v1000_v49 = vmul.f32 %v1532_v47, %v1972_v5 }
 0x430   :  { %v890_v46 = vpack.c.bf16 %v889_v44, %v889_v44 }
 0x431   :  { %v1001_v50 = vpack.c.bf16 %v1000_v49, %v1000_v49  ;;  %v1534_v51 = vpop.eup %1533 }
 0x432   :  { %1433 = vmatmul.mubr.msk.bf16.vlgmr.msra.gmra.mrb[28].mxu1 %vm327_vm4, %v890_v46  ;;  %v1111_v52 = vmul.f32 %v1534_v51, %v1980_v11  ;;  %v1500_v11 = vld [vmem:[#allocation12 + $0x8] sm:$0xff]  }
 0x433   :  { %1443 = vmatpush3.bf16.msra.mxu1 %v1008_v48  ;;  %1444 = vmatprep.mubr.msk.bf16.mxu1 %vm1710_vm0, %v1709_v0 }
 0x434   :  { %1454 = vmatprep.subr.bf16.mxu1 %v1709_v0  ;;  %v1112_v53 = vpack.c.bf16 %v1111_v52, %v1111_v52  ;;  %1463 = vmatpush3.bf16.msra.mxu0 %v1500_v11 }
 0x435   :  { %1464 = vmatprep.subr.bf16.mxu0 %v1709_v0 }
 0x438   :  { %1465 = vmatpush3.bf16.msra.mxu0 %v1501_v16 }
 0x439   :  { %1466 = vmatprep.subr.bf16.mxu0 %v1709_v0 }
 0x43a   :  { %1445 = vmatmul.mubr.msk.bf16.vlgmr.msra.gmra.mrb[32].mxu1 %vm327_vm4, %v1001_v50 }
 0x43b   :  { %1455 = vmatpush3.bf16.msra.mxu1 %v1008_v48  ;;  %1456 = vmatprep.mubr.msk.bf16.mxu1 %vm1710_vm0, %v1709_v0 }
 0x43c   :  { %1467 = vmatpush3.bf16.msra.mxu0 %v1502_v17 }
 0x442   :  { %1457 = vmatmul.mubr.msk.bf16.vlgmr.msra.gmra.mrb[36].mxu1 %vm327_vm4, %v1112_v53 }
 0x4b9   :  { %v383_v54 = vpop.f32.mrb[8].mxu1 }
 0x4ba   :  { %389 = vst.msk [vmem:[#allocation2] sm:$0xff] %vm279_vm2, %v383_v54  ;;  %v1374_v55 = vpop.f32.mrb[9].mxu1 }
 0x4bb   :  { %v386_v56 = vpop.f32.mrb[10].mxu1 }
 0x4bc   :  { %v1375_v57 = vpop.f32.mrb[11].mxu1 }
 0x4c1   :  { %v485_v58 = vpop.f32.mrb[12].mxu1 }
 0x4c2   :  { %492 = vrot.lane.b32.xlu1 %v485_v58, %s1716_s26  ;;  %v1386_v59 = vpop.f32.mrb[13].mxu1 }
 0x4c3   :  { %v488_v60 = vpop.f32.mrb[14].mxu1 }
 0x4c4   :  { %v1387_v61 = vpop.f32.mrb[15].mxu1 }
 0x4c9   :  { %v602_v62 = vpop.f32.mrb[16].mxu1 }
 0x4ca   :  { %609 = vrot.lane.b32.xlu1 %v602_v62, %s1715_s7  ;;  %v1398_v63 = vpop.f32.mrb[17].mxu1 }
 0x4cb   :  { %v605_v1 = vpop.f32.mrb[18].mxu1 }
 0x4cc   :  { %v1399_v2 = vpop.f32.mrb[19].mxu1 }
 0x4d1   :  { %v709_v3 = vpop.f32.mrb[20].mxu1 }
 0x4d2   :  { %716 = vrot.lane.b32.xlu0 %v709_v3, %s1711_s5  ;;  %v1410_v4 = vpop.f32.mrb[21].mxu1 }
 0x4d3   :  { %v712_v5 = vpop.f32.mrb[22].mxu1 }
 0x4d4   :  { %v1411_v6 = vpop.f32.mrb[23].mxu1 }
 0x4ee   :  { %v826_v7 = vpop.f32.mrb[24].mxu1 }
 0x4ef   :  { %832 = vst.msk [vmem:[#allocation2 + $0x8] sm:$0xff] %vm279_vm2, %v826_v7  ;;  %v1422_v8 = vpop.f32.mrb[25].mxu1 }
 0x4f0   :  { %v829_v9 = vpop.f32.mrb[26].mxu1 }
 0x4f1   :  { %v1423_v10 = vpop.f32.mrb[27].mxu1 }
 0x505   :  { %v928_v12 = vpop.f32.mrb[28].mxu1 }
 0x506   :  { %935 = vrot.lane.b32.xlu1 %v928_v12, %s1716_s26  ;;  %v1434_v13 = vpop.f32.mrb[29].mxu1 }
 0x507   :  { %v931_v14 = vpop.f32.mrb[30].mxu1 }
 0x508   :  { %v1435_v15 = vpop.f32.mrb[31].mxu1 }
 0x50d   :  { %v1044_v18 = vpop.f32.mrb[32].mxu1 }
 0x50e   :  { %1051 = vrot.lane.b32.xlu1 %v1044_v18, %s1715_s7  ;;  %v1446_v19 = vpop.f32.mrb[33].mxu1 }
 0x50f   :  { %v1047_v20 = vpop.f32.mrb[34].mxu1 }
 0x510   :  { %v1447_v21 = vpop.f32.mrb[35].mxu1 }
 0x515   :  { %v1150_v31 = vpop.f32.mrb[36].mxu1 }
 0x516   :  { %1157 = vrot.lane.b32.xlu1 %v1150_v31, %s1711_s5  ;;  %v1458_v22 = vpop.f32.mrb[37].mxu1 }
 0x517   :  { %v1153_v23 = vpop.f32.mrb[38].mxu1 }
 0x518   :  { %v1459_v24 = vpop.f32.mrb[39].mxu1 }
 0x534   :  { %v493_v25 = vpop.permute.xlu1 %492 }
 0x535   :  { %496 = vst.msk [vmem:[#allocation2] sm:$0xff] %vm495_vm6, %v493_v25 }
 0x53c   :  { %v610_v26 = vpop.permute.xlu1 %609 }
 0x53d   :  { %613 = vst.msk [vmem:[#allocation2] sm:$0xff] %vm612_vm7, %v610_v26 }
 0x544   :  { %v717_v0 = vpop.permute.xlu0 %716 }
 0x545   :  { %720 = vst.msk [vmem:[#allocation2] sm:$0xff] %vm719_vm8, %v717_v0 }
 0x54c   :  { %v1161_v32 = vld [vmem:[#allocation2] sm:$0xff] }
 0x578   :  { %v936_v27 = vpop.permute.xlu1 %935 }
 0x579   :  { %938 = vst.msk [vmem:[#allocation2 + $0x8] sm:$0xff] %vm495_vm6, %v936_v27 }
 0x580   :  { %v1052_v28 = vpop.permute.xlu1 %1051 }
 0x581   :  { %1054 = vst.msk [vmem:[#allocation2 + $0x8] sm:$0xff] %vm612_vm7, %v1052_v28 }
 0x588   :  { %v1158_v30 = vpop.permute.xlu1 %1157 }
 0x589   :  { %1160 = vst.msk [vmem:[#allocation2 + $0x8] sm:$0xff] %vm719_vm8, %v1158_v30 }
 0x590   :  { %v1162_v33 = vld [vmem:[#allocation2 + $0x8] sm:$0xff] }
 0x591   :  { %v1163_v34 = vpack.c.bf16 %v1162_v33, %v1161_v32 }
 0x593   :  { %1469 = vmatmul.mubr.msk.bf16.vlgmr.msra.gmra.mrb[32].mxu0 %vm142_vm1, %v1163_v34 }
 0x666   :  { %v1233_v35 = vpop.f32.mrb[32].mxu0 }
 0x667   :  { %1240 = vst [vmem:[#allocation14] sm:$0xff] %v1233_v35  ;;  %v1470_v36 = vpop.f32.mrb[33].mxu0 }
 0x668   :  { %v1236_v37 = vpop.f32.mrb[34].mxu0 }
 0x669   :  { %1241 = vst [vmem:[#allocation14 + $0x8] sm:$0xff] %v1236_v37  ;;  %v1471_v38 = vpop.f32.mrb[35].mxu0 }
 0x66a   :  { %1678 = shalt.err (!%p1675_p10)
}
 0x66b   :  { %s1679_s10 = scalar_lea.hbm %s2061_s6, 256 }
 0x66c   :  { %p1680_p11 = scmp.ne.s32.totalorder %s2061_s6, %s1679_s10  ;;  %p1683_p12 = scmp.lt.u32.totalorder %s1679_s10, %s2061_s6 }
 0x66e   :  { %p1685_p13 = pnand %p1683_p12, %p1680_p11 }
 0x670   :  { %1688 = shalt.err (!%p1685_p13)
}
 0x671   :  { %1253 = dma.vmem_to_hbm [thread:$0]  %s1248_s28, 256, %s2061_s6, [#allocation5], %s1704_s22, %s1704_s22, %s1705_s23  }
 0x672   :  { %1697 = dma.done.wait [#allocation5], 256  }
 0x673   :  { %1698 = vsyncadd [#allocation5], 4294967040 }
 0x674   :  { %1257 = vsyncpa [#allocation4], 1 }
 0x675   :  { %1258 = vsyncpa [#allocation7], 1 }
 0x676   :  { %1259 = vsyncpa [#allocation10], 1 }
 0x677   :  { %1260 = vsyncpa [#allocation13], 1 }
 0x678   :  { %1261 = vsyncpa [#allocation5], 1 }

</bundles_post_ra>
